<compile_context>
chip_gen: v7x
topology: tpu7x:2x2x1
jax: 0.10.0
libtpu: 0.0.40
codegen_flags: <defaults>
</compile_context>

<pallas_src>
import jax
import jax.numpy as jnp
from jax import lax
from jax.experimental import pallas as pl
from jax.experimental.pallas import tpu as pltpu

_LANE = 128
# ((lhs_contract, rhs_contract), (lhs_batch, rhs_batch)): (1,H) x (bt,H) -> (1,bt)
_NT_DIMS = (((1,), (1,)), ((), ()))


def _round_up(n, m):
    return ((n + m - 1) // m) * m


def mlp_critic_kernel(x_ref, w1_ref, b1_ref, w2t_ref, b2_ref, o_ref):
    # Layer 1 on the MXU: (bt, D) @ (D, Hp), f32 accumulation.
    h = jnp.dot(x_ref[...], w1_ref[...], preferred_element_type=jnp.float32)
    h = jnp.maximum(h + b1_ref[...], 0.0)            # bias + ReLU in f32 (VPU)
    # Layer 2 folded into the transposed-output form: contract over H so the
    # result is (1, bt) -- batch on the lane axis -> lane-dense store.
    v = lax.dot_general(w2t_ref[...], h.astype(w2t_ref.dtype), _NT_DIMS,
                        preferred_element_type=jnp.float32)
    o_ref[...] = (v + b2_ref[...]).astype(o_ref.dtype)


def _build_pallas_call(batch_tile, D, Hp, n_tiles, mxu_dtype,
                       *, single_buffer_weights):
    const_kwargs = (
        dict(pipeline_mode=pl.Buffered(1)) if single_buffer_weights else {})

    def const_spec(shape):
        # Grid-invariant operand (weights / biases): always block (0, 0, ...).
        return pl.BlockSpec(shape, lambda i: (0,) * len(shape), **const_kwargs)

    B_pad = n_tiles * batch_tile
    isz = jnp.dtype(mxu_dtype).itemsize

    # VMEM budget from the actual tiles (x/out double-buffered, weights counted
    # double-buffered to be conservative), clamped so it is legal everywhere.
    tile_bytes = 2 * (batch_tile * D * isz + batch_tile * 4)
    weight_bytes = 2 * (D * Hp * isz + Hp * 4 + Hp * isz + 4)
    vmem_limit = int(min(32 * 1024 * 1024,
                         max(16 * 1024 * 1024, 4 * (tile_bytes + weight_bytes))))

    cost = pl.CostEstimate(
        flops=2 * B_pad * D * Hp + 2 * B_pad * Hp,
        transcendentals=0,
        bytes_accessed=(B_pad * D * isz + D * Hp * isz + Hp * (4 + isz) + 4
                        + B_pad * 4),
    )

    return pl.pallas_call(
        mlp_critic_kernel,
        out_shape=jax.ShapeDtypeStruct((1, B_pad), jnp.float32),
        grid_spec=pltpu.PrefetchScalarGridSpec(
            num_scalar_prefetch=0,
            grid=(n_tiles,),
            in_specs=[
                pl.BlockSpec((batch_tile, D), lambda i: (i, 0)),  # x tile
                const_spec((D, Hp)),                              # W1 (resident)
                const_spec((1, Hp)),                              # b1
                const_spec((1, Hp)),                              # W2 row
                const_spec((1, 1)),                               # b2
            ],
            out_specs=pl.BlockSpec((1, batch_tile), lambda i: (0, i)),
        ),
        compiler_params=pltpu.CompilerParams(
            dimension_semantics=("parallel",),
            vmem_limit_bytes=vmem_limit,
        ),
        cost_estimate=cost,
    )


def mlp_critic_forward(x, w1, b1, w2, b2, *, batch_tile=128,
                       mxu_dtype=jnp.bfloat16):
    """Fused MLP-critic forward: (B, D) -> (B, 1).

    Matches nn.Linear(D, H) -> ReLU -> nn.Linear(H, 1) with weights given as
    w1: (D, H), b1: (H,)|(1, H), w2: (H, 1), b2: ()|(1, 1).
    """
    B, D = x.shape
    H = w1.shape[1]
    out_dtype = x.dtype

    Hp = _round_up(H, _LANE)                 # lane-dense hidden (zero padded)
    n_tiles = max(1, pl.cdiv(B, batch_tile))
    B_pad = n_tiles * batch_tile

    x_p = jnp.pad(x, ((0, B_pad - B), (0, 0))).astype(mxu_dtype)
    w1_p = jnp.pad(w1, ((0, 0), (0, Hp - H))).astype(mxu_dtype)
    b1_p = jnp.pad(jnp.reshape(b1, (1, H)),
                   ((0, 0), (0, Hp - H))).astype(jnp.float32)
    w2t_p = jnp.pad(jnp.reshape(w2, (1, H)),
                    ((0, 0), (0, Hp - H))).astype(mxu_dtype)
    b2_p = jnp.reshape(b2, (1, 1)).astype(jnp.float32)

    args = (x_p, w1_p, b1_p, w2t_p, b2_p)
    try:
        out = _build_pallas_call(batch_tile, D, Hp, n_tiles, mxu_dtype,
                                 single_buffer_weights=True)(*args)
    except Exception:
        # Pallas build without BlockSpec(pipeline_mode=...): fall back to the
        # default (double-buffered) pipeline; semantics are identical.
        out = _build_pallas_call(batch_tile, D, Hp, n_tiles, mxu_dtype,
                                 single_buffer_weights=False)(*args)

    # (1, B_pad) lane-dense slab -> (B, 1) column, dropping batch padding.
    return out[0, :B].reshape(B, 1).astype(out_dtype)


def init_params(key, input_dim, hidden_dim):
    """PyTorch nn.Linear-style init (uniform +/- 1/sqrt(fan_in))."""
    k1, k2, k3, k4 = jax.random.split(key, 4)
    bound1 = 1.0 / jnp.sqrt(input_dim)
    bound2 = 1.0 / jnp.sqrt(hidden_dim)
    w1 = jax.random.uniform(k1, (input_dim, hidden_dim), jnp.float32,
                            minval=-bound1, maxval=bound1)
    b1 = jax.random.uniform(k2, (1, hidden_dim), jnp.float32,
                            minval=-bound1, maxval=bound1)
    w2 = jax.random.uniform(k3, (hidden_dim, 1), jnp.float32,
                            minval=-bound2, maxval=bound2)
    b2 = jax.random.uniform(k4, (1, 1), jnp.float32,
                            minval=-bound2, maxval=bound2)
    return w1, b1, w2, b2


if __name__ == "__main__":
    key = jax.random.PRNGKey(0)
    kx, kp = jax.random.split(key)

    # Small shapes; batch pads 200 -> 256 (two 128-row tiles), hidden 64 -> 128.
    batch, input_dim, hidden_dim = 200, 32, 64
    x = jax.random.normal(kx, (batch, input_dim), jnp.float32)
    w1, b1, w2, b2 = init_params(kp, input_dim, hidden_dim)

    # Pure-JAX reference of the module's forward (f32).
    ref = jnp.maximum(x @ w1 + b1, 0.0) @ w2 + b2

    # Exact-precision path: f32 MXU operands, tight functional check.
    v_f32 = jax.block_until_ready(
        mlp_critic_forward(x, w1, b1, w2, b2, mxu_dtype=jnp.float32))
    assert v_f32.shape == (batch, 1)
    assert jnp.allclose(v_f32, ref, atol=1e-4, rtol=1e-4), (
        "f32 path mismatch", float(jnp.max(jnp.abs(v_f32 - ref))))

    # Default perf path: bf16 MXU operands with f32 accumulation.
    v = jax.block_until_ready(mlp_critic_forward(x, w1, b1, w2, b2))
    assert v.shape == (batch, 1)
    assert jnp.allclose(v, ref, atol=5e-2, rtol=5e-2), (
        "bf16 path mismatch", float(jnp.max(jnp.abs(v - ref))))

    print("KERNEL_OK")
</pallas_src>

<mosaic_0001>
module attributes {stable_mosaic.version = 11 : i64} {
  func.func @mlp_critic_kernel(%arg0: i32, %arg1: memref<128x32xf32, #tpu.memory_space<vmem>>, %arg2: memref<32x128xf32, #tpu.memory_space<vmem>>, %arg3: memref<1x128xf32, #tpu.memory_space<vmem>>, %arg4: memref<1x128xf32, #tpu.memory_space<vmem>>, %arg5: memref<1x1xf32, #tpu.memory_space<vmem>>, %arg6: memref<1x128xf32, #tpu.memory_space<vmem>>) attributes {dimension_semantics = [#tpu.dimension_semantics<parallel>], iteration_bounds = array<i64: 2>, scalar_prefetch = 0 : i64, scratch_operands = 0 : i64, tpu.core_type = #tpu.core_type<tc>, window_params = [{transform_indices = @transform_0, window_bounds = array<i64: 128, 32>}, {pipeline_mode = #tpu.pipeline_mode<synchronous>, transform_indices = @transform_1, window_bounds = array<i64: 32, 128>}, {pipeline_mode = #tpu.pipeline_mode<synchronous>, transform_indices = @transform_2, window_bounds = array<i64: 1, 128>}, {pipeline_mode = #tpu.pipeline_mode<synchronous>, transform_indices = @transform_3, window_bounds = array<i64: 1, 128>}, {pipeline_mode = #tpu.pipeline_mode<synchronous>, transform_indices = @transform_4, window_bounds = array<i64: 1, 1>}, {transform_indices = @transform_5, window_bounds = array<i64: 1, 128>}]} {
    %c0 = arith.constant 0 : index
    %c0_0 = arith.constant 0 : index
    %0 = vector.load %arg1[%c0, %c0_0] : memref<128x32xf32, #tpu.memory_space<vmem>>, vector<128x32xf32>
    %c0_1 = arith.constant 0 : index
    %c0_2 = arith.constant 0 : index
    %1 = vector.load %arg2[%c0_1, %c0_2] : memref<32x128xf32, #tpu.memory_space<vmem>>, vector<32x128xf32>
    %cst = arith.constant dense<0.000000e+00> : vector<128x128xf32>
    %2 = tpu.matmul %0, %1, %cst {dimension_numbers = #tpu.dot_dimension_numbers<[1], [0], [0], [1], [0, 0, 1, 1], [], []>} : vector<128x32xf32>, vector<32x128xf32>, vector<128x128xf32> -> vector<128x128xf32>
    %c0_3 = arith.constant 0 : index
    %c0_4 = arith.constant 0 : index
    %3 = vector.load %arg3[%c0_3, %c0_4] : memref<1x128xf32, #tpu.memory_space<vmem>>, vector<1x128xf32>
    %4 = vector.broadcast %3 : vector<1x128xf32> to vector<128x128xf32>
    %5 = arith.addf %2, %4 : vector<128x128xf32>
    %cst_5 = arith.constant 0.000000e+00 : f32
    %6 = vector.broadcast %cst_5 : f32 to vector<128x128xf32>
    %7 = arith.maximumf %5, %6 : vector<128x128xf32>
    %c0_6 = arith.constant 0 : index
    %c0_7 = arith.constant 0 : index
    %8 = vector.load %arg4[%c0_6, %c0_7] : memref<1x128xf32, #tpu.memory_space<vmem>>, vector<1x128xf32>
    %cst_8 = arith.constant dense<0.000000e+00> : vector<1x128xf32>
    %9 = tpu.matmul %8, %7, %cst_8 {dimension_numbers = #tpu.dot_dimension_numbers<[1], [1], [0], [0], [0, 0, 1, 0], [], []>} : vector<1x128xf32>, vector<128x128xf32>, vector<1x128xf32> -> vector<1x128xf32>
    %c0_9 = arith.constant 0 : index
    %c0_10 = arith.constant 0 : index
    %10 = vector.load %arg5[%c0_9, %c0_10] : memref<1x1xf32, #tpu.memory_space<vmem>>, vector<1x1xf32>
    %11 = vector.broadcast %10 : vector<1x1xf32> to vector<1x128xf32>
    %12 = arith.addf %9, %11 : vector<1x128xf32>
    %c0_11 = arith.constant 0 : index
    %c0_12 = arith.constant 0 : index
    %13 = vector.load %arg6[%c0_11, %c0_12] : memref<1x128xf32, #tpu.memory_space<vmem>>, vector<1x128xf32>
    tpu.vector_store %arg6[%c0_11, %c0_12], %12 {strides = array<i32>} : memref<1x128xf32, #tpu.memory_space<vmem>>, vector<1x128xf32>,
    return
  }
  func.func @transform_0(%arg0: i32) -> (i32, i32) {
    %c0_i32 = arith.constant 0 : i32
    %c0_i32_0 = arith.constant 0 : i32
    return %arg0, %c0_i32 : i32, i32
  }
  func.func @transform_1(%arg0: i32) -> (i32, i32) {
    %c0_i32 = arith.constant 0 : i32
    %c0_i32_0 = arith.constant 0 : i32
    %c0_i32_1 = arith.constant 0 : i32
    return %c0_i32, %c0_i32_0 : i32, i32
  }
  func.func @transform_2(%arg0: i32) -> (i32, i32) {
    %c0_i32 = arith.constant 0 : i32
    %c0_i32_0 = arith.constant 0 : i32
    %c0_i32_1 = arith.constant 0 : i32
    return %c0_i32, %c0_i32_0 : i32, i32
  }
  func.func @transform_3(%arg0: i32) -> (i32, i32) {
    %c0_i32 = arith.constant 0 : i32
    %c0_i32_0 = arith.constant 0 : i32
    %c0_i32_1 = arith.constant 0 : i32
    return %c0_i32, %c0_i32_0 : i32, i32
  }
  func.func @transform_4(%arg0: i32) -> (i32, i32) {
    %c0_i32 = arith.constant 0 : i32
    %c0_i32_0 = arith.constant 0 : i32
    %c0_i32_1 = arith.constant 0 : i32
    return %c0_i32, %c0_i32_0 : i32, i32
  }
  func.func @transform_5(%arg0: i32) -> (i32, i32) {
    %c0_i32 = arith.constant 0 : i32
    %c0_i32_0 = arith.constant 0 : i32
    return %c0_i32, %arg0 : i32, i32
  }
}

module attributes {stable_mosaic.version = 11 : i64} {
  func.func @mlp_critic_kernel(%arg0: i32, %arg1: memref<128x32xf32, #tpu.memory_space<vmem>>, %arg2: memref<32x128xf32, #tpu.memory_space<vmem>>, %arg3: memref<1x128xf32, #tpu.memory_space<vmem>>, %arg4: memref<1x128xf32, #tpu.memory_space<vmem>>, %arg5: memref<1x1xf32, #tpu.memory_space<vmem>>, %arg6: memref<1x128xf32, #tpu.memory_space<vmem>>) attributes {dimension_semantics = [#tpu.dimension_semantics<parallel>], iteration_bounds = array<i64: 2>, scalar_prefetch = 0 : i64, scratch_operands = 0 : i64, tpu.core_type = #tpu.core_type<tc>, window_params = [{transform_indices = @transform_0, window_bounds = array<i64: 128, 32>}, {pipeline_mode = #tpu.pipeline_mode<synchronous>, transform_indices = @transform_1, window_bounds = array<i64: 32, 128>}, {pipeline_mode = #tpu.pipeline_mode<synchronous>, transform_indices = @transform_2, window_bounds = array<i64: 1, 128>}, {pipeline_mode = #tpu.pipeline_mode<synchronous>, transform_indices = @transform_3, window_bounds = array<i64: 1, 128>}, {pipeline_mode = #tpu.pipeline_mode<synchronous>, transform_indices = @transform_4, window_bounds = array<i64: 1, 1>}, {transform_indices = @transform_5, window_bounds = array<i64: 1, 128>}]} {
    %c0 = arith.constant 0 : index
    %c0_0 = arith.constant 0 : index
    %0 = vector.load %arg1[%c0, %c0_0] : memref<128x32xf32, #tpu.memory_space<vmem>>, vector<128x32xf32>
    %c0_1 = arith.constant 0 : index
    %c0_2 = arith.constant 0 : index
    %1 = vector.load %arg2[%c0_1, %c0_2] : memref<32x128xf32, #tpu.memory_space<vmem>>, vector<32x128xf32>
    %cst = arith.constant dense<0.000000e+00> : vector<128x128xf32>
    %2 = tpu.matmul %0, %1, %cst {dimension_numbers = #tpu.dot_dimension_numbers<[1], [0], [0], [1], [0, 0, 1, 1], [], []>} : vector<128x32xf32>, vector<32x128xf32>, vector<128x128xf32> -> vector<128x128xf32>
    %c0_3 = arith.constant 0 : index
    %c0_4 = arith.constant 0 : index
    %3 = vector.load %arg3[%c0_3, %c0_4] : memref<1x128xf32, #tpu.memory_space<vmem>>, vector<1x128xf32>
    %4 = vector.broadcast %3 : vector<1x128xf32> to vector<128x128xf32>
    %5 = arith.addf %2, %4 : vector<128x128xf32>
    %cst_5 = arith.constant 0.000000e+00 : f32
    %6 = vector.broadcast %cst_5 : f32 to vector<128x128xf32>
    %7 = arith.maximumf %5, %6 : vector<128x128xf32>
    %c0_6 = arith.constant 0 : index
    %c0_7 = arith.constant 0 : index
    %8 = vector.load %arg4[%c0_6, %c0_7] : memref<1x128xf32, #tpu.memory_space<vmem>>, vector<1x128xf32>
    %cst_8 = arith.constant dense<0.000000e+00> : vector<1x128xf32>
    %9 = tpu.matmul %8, %7, %cst_8 {dimension_numbers = #tpu.dot_dimension_numbers<[1], [1], [0], [0], [0, 0, 1, 0], [], []>} : vector<1x128xf32>, vector<128x128xf32>, vector<1x128xf32> -> vector<1x128xf32>
    %c0_9 = arith.constant 0 : index
    %c0_10 = arith.constant 0 : index
    %10 = vector.load %arg5[%c0_9, %c0_10] : memref<1x1xf32, #tpu.memory_space<vmem>>, vector<1x1xf32>
    %11 = vector.broadcast %10 : vector<1x1xf32> to vector<1x128xf32>
    %12 = arith.addf %9, %11 : vector<1x128xf32>
    %c0_11 = arith.constant 0 : index
    %c0_12 = arith.constant 0 : index
    %13 = vector.load %arg6[%c0_11, %c0_12] : memref<1x128xf32, #tpu.memory_space<vmem>>, vector<1x128xf32>
    tpu.vector_store %arg6[%c0_11, %c0_12], %12 {strides = array<i32>} : memref<1x128xf32, #tpu.memory_space<vmem>>, vector<1x128xf32>,
    return
  }
  func.func @transform_0(%arg0: i32) -> (i32, i32) {
    %c0_i32 = arith.constant 0 : i32
    %c0_i32_0 = arith.constant 0 : i32
    return %arg0, %c0_i32 : i32, i32
  }
  func.func @transform_1(%arg0: i32) -> (i32, i32) {
    %c0_i32 = arith.constant 0 : i32
    %c0_i32_0 = arith.constant 0 : i32
    %c0_i32_1 = arith.constant 0 : i32
    return %c0_i32, %c0_i32_0 : i32, i32
  }
  func.func @transform_2(%arg0: i32) -> (i32, i32) {
    %c0_i32 = arith.constant 0 : i32
    %c0_i32_0 = arith.constant 0 : i32
    %c0_i32_1 = arith.constant 0 : i32
    return %c0_i32, %c0_i32_0 : i32, i32
  }
  func.func @transform_3(%arg0: i32) -> (i32, i32) {
    %c0_i32 = arith.constant 0 : i32
    %c0_i32_0 = arith.constant 0 : i32
    %c0_i32_1 = arith.constant 0 : i32
    return %c0_i32, %c0_i32_0 : i32, i32
  }
  func.func @transform_4(%arg0: i32) -> (i32, i32) {
    %c0_i32 = arith.constant 0 : i32
    %c0_i32_0 = arith.constant 0 : i32
    %c0_i32_1 = arith.constant 0 : i32
    return %c0_i32, %c0_i32_0 : i32, i32
  }
  func.func @transform_5(%arg0: i32) -> (i32, i32) {
    %c0_i32 = arith.constant 0 : i32
    %c0_i32_0 = arith.constant 0 : i32
    return %c0_i32, %arg0 : i32, i32
  }
}

</mosaic_0001>

<bundles_post_ra>
// kernel: tpu_custom_call.1
= control target key start
LH: loop header
LB: loop body
LE: loop exit
PB: predicated region body
PF: predicated region fallthrough
CT: control target
= control target key end

     0   :  { %s1080_s0 = inlined_call_operand.vmem [shape: f32[256,32], index: 0, kind: input, shape index: {}]   ;;  %s1081_s1 = inlined_call_operand.vmem [shape: f32[32,128], index: 1, kind: input, shape index: {}]   ;;  %s1082_s2 = inlined_call_operand.vmem [shape: f32[1,128], index: 2, kind: input, shape index: {}]   ;;  %s1083_s3 = inlined_call_operand.vmem [shape: f32[1,128], index: 3, kind: input, shape index: {}]   ;;  %s1084_s4 = inlined_call_operand.<no memory space> [shape: f32[1,1], index: 4, kind: input, shape index: {}]   ;;  %s1085_s5 = inlined_call_operand.hbm [shape: f32[1,256], index: 5, kind: output, shape index: {}]  }
   0x1   :  { %v10_v0 = vstv %s1084_s4 }
   0x2   :  { %11 = vst [vmem:[#allocation2] sm:$0x1] %v10_v0 }
   0x3   :  { %12 = vsyncpa [#allocation4], 0 }
   0x4   :  { %14 = vsyncpa [#allocation4 + $0x1], 0  ;;  %s921_s20 = smov 0   ;;  %s923_s21 = smov 0  }
   0x5   :  { %s925_s22 = smov 0   ;;  %s927_s23 = smov 0  }
   0x6 LB: > { %s612_s4 = sadd.s32 4294967295, %s881_s23   ;;  %s613_s24 = sadd.s32 4294967294, %s881_s23   ;;  %s881_s23 = sphi %s927_s23, %s1091_s23   ;;  %s877_s22 = sphi %s925_s22, %s1090_s22   ;;  %s873_s21 = sphi %s923_s21, %s1089_s21   ;;  %s869_s20 = sphi %s921_s20, %s1088_s20  }
   0x7   : > { %s944_s25 = sadd.s32 1, %s881_s23   ;;  %s137_s26 = sadd.s32 1, %s877_s22 }
   0x8   : > { %s134_s27 = ssub.s32 %s881_s23, %s944_s25  ;;  %p147_p0 = scmp.ne.s32.totalorder %s877_s22, %s873_s21 }
   0x9   : > { %p135_p1 = scmp.eq.s32.totalorder %s134_s27, 0  ;;  %p148_p2 = scmp.eq.s32.totalorder %s612_s4, 1 }
   0xa   : > { %p153_p3 = scmp.ne.s32.totalorder %s873_s21, %s869_s20  ;;  %p154_p4 = scmp.eq.s32.totalorder %s613_s24, 1 }
   0xb   : > { %s954_s28 = scalar_select %p135_p1, %s877_s22, %s137_s26  }
   0xc   : > { %p956_p5 = por %p148_p2, %p147_p0  ;;  %p960_p6 = por %p154_p4, %p153_p3 }
   0xd   : > { %p616_p7 = scmp.ge.s32.totalorder %s881_s23, 1  ;;  %p193_p8 = scmp.lt.s32.totalorder %s881_s23, 3 }
   0xf   : > { %p194_p9 = pnand %p616_p7, %p193_p8 }
  0x10   : > { %v242_v1 = vld [vmem:[%s1081_s1] sm:$0xff] (!%p194_p9)  ;;  %v243_v2 = vld [vmem:[%s1081_s1 + $0x8] sm:$0xff] (!%p194_p9)  ;;  %v244_v3 = vld [vmem:[%s1081_s1 + $0x10] sm:$0xff] (!%p194_p9)  ;;  %s975_s12 = sshll.u32 (!%p194_p9), %s612_s4, 4  ;;  %vm253_vm0 = vcmask (!%p194_p9), 261120   ;;  %v883_v23 = vmov (!%p194_p9), 0.0|0.0  }
  0x11   : > { %197 = sbr.rel (%p194_p9) target bundleno = 540 (0x21c), region = 40  ;;  %v743_v4 = vpack.c.bf16 (!%p194_p9), %v243_v2, %v242_v1  ;;  %v245_v5 = vld [vmem:[%s1081_s1 + $0x18] sm:$0xff] (!%p194_p9)  ;;  %p221_p10 = scmp.lt.s32.totalorder (!%p194_p9), %s975_s12, 31  ;;  %751 = vmatprep.subr.bf16.mxu1 (!%p194_p9), %v883_v23  ;;  %vm884_vm1 = vmmov (!%p194_p9), 0   ;;  %v885_v24 = vmov (!%p194_p9), 0.0   ;;  %v886_v26 = vmov (!%p194_p9), 0  }
  0x12   : > { %v747_v6 = vpack.c.bf16 (!%p194_p9), %v245_v5, %v244_v3  ;;  %740 = vmatprep.mubr.msk.f32.mxu1 (!%p194_p9), %vm884_vm1, %v885_v24  ;;  %v464_v25 = vld [vmem:[#allocation2] sm:$0x1] (!%p194_p9)  ;;  %818 = vset.pattern.permute.xlu0 (!%p194_p9), %v886_v26  ;;  %s218_s6 = sand.u32 (!%p194_p9), 1, %s873_s21   ;;  %s1038_s11 = scalar_lea.hbm (!%p194_p9), %s1085_s5, %s975_s12 }
  0x13   : > { %744 = vmatprep.subr.bf16.mxu0 (!%p194_p9), %v743_v4  ;;  %467 = vperm.xlu0 (!%p194_p9), %818, %v464_v25   ;;  %v619_v27 = vld [vmem:[%s1082_s2] ss:$0 sm:$0xff] (!%p194_p9)  ;;  %s219_s7 = scalar_lea.vmem (!%p194_p9), [#allocation3], %s218_s6  ;;  %s546_s13 = scalar_lea.sflag (!%p194_p9), [#allocation4], %s218_s6 }
  0x14   : > { %746 = vmatpush3.bf16.msra.mxu0 (!%p194_p9), %v743_v4  ;;  %s558_s8 = sshll.u32 (!%p194_p9), %s219_s7, 4  ;;  %s1040_s8 = int_to_ptr.vmem [resolvable:$true] %s558_s8 }
  0x15   : > { %748 = vmatprep.subr.bf16.mxu0 (!%p194_p9), %v747_v6  ;;  %s819_s14 = scalar_lea.vmem (!%p194_p9), %s1040_s8, 16 }
  0x16   : > { %p820_p11 = scmp.ne.s32.totalorder (!%p194_p9), %s1040_s8, %s819_s14 }
  0x18   : > { %s222_s15 = scalar_select %p221_p10, %s975_s12, 31  ;;  %750 = vmatpush3.bf16.msra.mxu0 %v747_v6 }
  0x19   : > { %p821_p12 = pnand %p820_p11, %p956_p5 }
  0x1a   : > { %s618_s16 = sshll.u32 %s222_s15, 3  ;;  %s887_s15 = smov [#allocation3]  }
  0x1b   : > { %s985_s19 = scalar_lea.vmem %s1080_s0, %s618_s16  ;;  %p822_p13 = pneg %p821_p12 }
  0x1c   : > { %v226_v7 = vld [vmem:[%s985_s19] sm:$0xff]  ;;  %v227_v8 = vld [vmem:[%s985_s19 + $0x8] sm:$0xff]  ;;  %v228_v9 = vld [vmem:[%s985_s19 + $0x10] sm:$0xff]  ;;  %s823_s16 = sshll.u32 %s887_s15, 4  ;;  %s824_s16 = int_to_ptr.vmem [resolvable:$false] %s823_s16 }
  0x1d   : > { %684 = vmatprep.mubr.msk.f32.mxu0 %vm253_vm0, %v226_v7  ;;  %v229_v10 = vld [vmem:[%s985_s19 + $0x18] sm:$0xff]  ;;  %v230_v11 = vld [vmem:[%s985_s19 + $0x20] sm:$0xff]  ;;  %v231_v12 = vld [vmem:[%s985_s19 + $0x28] sm:$0xff]  ;;  %s825_s17 = scalar_lea.vmem %s824_s16, 32  ;;  %p826_p0 = scmp.lt.s32.totalorder %s1040_s8, %s824_s16 }
  0x1e   : > { %685 = vmatmul.mubr.msk.f32.vlgmr.msra.gmra.mrb[0].mxu0 %vm253_vm0, %v227_v8  ;;  %v232_v13 = vld [vmem:[%s985_s19 + $0x30] sm:$0xff]  ;;  %v233_v14 = vld [vmem:[%s985_s19 + $0x38] sm:$0xff]  ;;  %v234_v15 = vld [vmem:[%s985_s19 + $0x40] sm:$0xff]  ;;  %p827_p1 = scmp.lt.s32.totalorder %s825_s17, %s819_s14 }
  0x1f   : > { %687 = vmatprep.mubr.msk.f32.mxu0 %vm253_vm0, %v228_v9  ;;  %v235_v16 = vld [vmem:[%s985_s19 + $0x48] sm:$0xff]  ;;  %v236_v17 = vld [vmem:[%s985_s19 + $0x50] sm:$0xff]  ;;  %v237_v18 = vld [vmem:[%s985_s19 + $0x58] sm:$0xff] }
  0x20   : > { %v238_v19 = vld [vmem:[%s985_s19 + $0x60] sm:$0xff]  ;;  %v239_v20 = vld [vmem:[%s985_s19 + $0x68] sm:$0xff]  ;;  %v240_v21 = vld [vmem:[%s985_s19 + $0x70] sm:$0xff]  ;;  %p828_p2 = por %p827_p1, %p826_p0 }
  0x21   : > { %v241_v22 = vld [vmem:[%s985_s19 + $0x78] sm:$0xff] }
  0x22   : > { %688 = vmatmul.mubr.msk.f32.gmra.mrb[2].mxu0 %vm253_vm0, %v229_v10  ;;  %p829_p3 = pnand %p828_p2, %p822_p13 }
  0x23   : > { %690 = vmatprep.mubr.msk.f32.mxu0 %vm253_vm0, %v230_v11 }
  0x26   : > { %691 = vmatmul.mubr.msk.f32.gmra.mrb[4].mxu0 %vm253_vm0, %v231_v12 }
  0x27   : > { %693 = vmatprep.mubr.msk.f32.mxu0 %vm253_vm0, %v232_v13 }
  0x2a   : > { %694 = vmatmul.mubr.msk.f32.gmra.mrb[6].mxu0 %vm253_vm0, %v233_v14 }
  0x2b   : > { %696 = vmatprep.mubr.msk.f32.mxu0 %vm253_vm0, %v234_v15 }
  0x2e   : > { %697 = vmatmul.mubr.msk.f32.gmra.mrb[8].mxu0 %vm253_vm0, %v235_v16 }
  0x2f   : > { %699 = vmatprep.mubr.msk.f32.mxu0 %vm253_vm0, %v236_v17 }
  0x32   : > { %700 = vmatmul.mubr.msk.f32.gmra.mrb[10].mxu0 %vm253_vm0, %v237_v18 }
  0x33   : > { %702 = vmatprep.mubr.msk.f32.mxu0 %vm253_vm0, %v238_v19 }
  0x36   : > { %703 = vmatmul.mubr.msk.f32.gmra.mrb[12].mxu0 %vm253_vm0, %v239_v20  ;;  %v463_v20 = vld [vmem:[%s1083_s3] sm:$0x1] }
  0x37   : > { %705 = vmatprep.mubr.msk.f32.mxu0 %vm253_vm0, %v240_v21  ;;  %v470_v21 = vlaneseq }
  0x3a   : > { %706 = vmatmul.mubr.msk.f32.gmra.mrb[14].mxu0 %vm253_vm0, %v241_v22  ;;  %v471_v22 = vshrl.u32 %v470_v21, 7 }
  0x3c   : > { %v472_v24 = vsub.s32 0, %v471_v22 }
  0x92   : > { %v468_v25 = vpop.permute.xlu0 %467 }
  0x93   : > { %v473_v26 = vrot.slane %v468_v25, %v472_v24 }
  0xf1   : > { %v686_v28 = vpop.f32.mrb[0].mxu0 }
  0xf2   : > { %v374_v29 = vadd.f32 %v686_v28, %v619_v27  ;;  %v368_v30 = vpop.f32.mrb[1].mxu0 }
  0xf3   : > { %v369_v31 = vadd.f32 %v619_v27, %v368_v30 }
  0xf4   : > { %v448_v32 = vmax.f32 %v374_v29, 0.0 }
  0xf5   : > { %v447_v33 = vmax.f32 %v369_v31, 0.0  ;;  %v689_v34 = vpop.f32.mrb[2].mxu0 }
  0xf6   : > { %v384_v35 = vadd.f32 %v689_v34, %v619_v27  ;;  %v378_v36 = vpop.f32.mrb[3].mxu0 }
  0xf7   : > { %v379_v37 = vadd.f32 %v619_v27, %v378_v36  ;;  %v752_v38 = vpack.c.bf16 %v448_v32, %v447_v33 }
  0xf8   : > { %v450_v39 = vmax.f32 %v384_v35, 0.0 }
  0xf9   : > { %v449_v40 = vmax.f32 %v379_v37, 0.0  ;;  %753 = vmatpush3.bf16.xpose.msra.mxu1 %v752_v38  ;;  %v692_v41 = vpop.f32.mrb[4].mxu0 }
  0xfa   : > { %v394_v42 = vadd.f32 %v692_v41, %v619_v27  ;;  %754 = vmatprep.subr.bf16.mxu1 %v883_v23  ;;  %v388_v43 = vpop.f32.mrb[5].mxu0 }
  0xfb   : > { %v755_v44 = vpack.c.bf16 %v450_v39, %v449_v40  ;;  %v389_v45 = vadd.f32 %v619_v27, %v388_v43 }
  0xfc   : > { %v452_v46 = vmax.f32 %v394_v42, 0.0 }
  0xfd   : > { %v451_v47 = vmax.f32 %v389_v45, 0.0  ;;  %v695_v48 = vpop.f32.mrb[6].mxu0 }
  0xfe   : > { %v404_v49 = vadd.f32 %v695_v48, %v619_v27  ;;  %v398_v50 = vpop.f32.mrb[7].mxu0 }
  0xff   : > { %v758_v51 = vpack.c.bf16 %v452_v46, %v451_v47  ;;  %v399_v52 = vadd.f32 %v619_v27, %v398_v50 }
 0x100   : > { %v454_v53 = vmax.f32 %v404_v49, 0.0 }
 0x101   : > { %756 = vmatpush3.bf16.xpose.msra.mxu1 %v755_v44  ;;  %v453_v54 = vmax.f32 %v399_v52, 0.0  ;;  %v698_v55 = vpop.f32.mrb[8].mxu0 }
 0x102   : > { %757 = vmatprep.subr.bf16.mxu1 %v883_v23  ;;  %v414_v56 = vadd.f32 %v698_v55, %v619_v27  ;;  %v408_v57 = vpop.f32.mrb[9].mxu0 }
 0x103   : > { %v761_v58 = vpack.c.bf16 %v454_v53, %v453_v54  ;;  %v409_v59 = vadd.f32 %v619_v27, %v408_v57 }
 0x104   : > { %v456_v60 = vmax.f32 %v414_v56, 0.0 }
 0x105   : > { %v455_v61 = vmax.f32 %v409_v59, 0.0  ;;  %v701_v62 = vpop.f32.mrb[10].mxu0 }
 0x106   : > { %v424_v63 = vadd.f32 %v701_v62, %v619_v27  ;;  %v418_v0 = vpop.f32.mrb[11].mxu0 }
 0x107   : > { %v764_v1 = vpack.c.bf16 %v456_v60, %v455_v61  ;;  %v419_v2 = vadd.f32 %v619_v27, %v418_v0 }
 0x108   : > { %v458_v3 = vmax.f32 %v424_v63, 0.0 }
 0x109   : > { %759 = vmatpush3.bf16.xpose.msra.mxu1 %v758_v51  ;;  %v457_v4 = vmax.f32 %v419_v2, 0.0  ;;  %v704_v5 = vpop.f32.mrb[12].mxu0 }
 0x10a   : > { %760 = vmatprep.subr.bf16.mxu1 %v883_v23  ;;  %v434_v6 = vadd.f32 %v704_v5, %v619_v27  ;;  %v428_v7 = vpop.f32.mrb[13].mxu0 }
 0x10b   : > { %v767_v8 = vpack.c.bf16 %v458_v3, %v457_v4  ;;  %v429_v9 = vadd.f32 %v619_v27, %v428_v7 }
 0x10c   : > { %v460_v10 = vmax.f32 %v434_v6, 0.0 }
 0x10d   : > { %v459_v11 = vmax.f32 %v429_v9, 0.0  ;;  %v707_v12 = vpop.f32.mrb[14].mxu0 }
 0x10e   : > { %v444_v13 = vadd.f32 %v707_v12, %v619_v27  ;;  %v438_v14 = vpop.f32.mrb[15].mxu0 }
 0x10f   : > { %v770_v15 = vpack.c.bf16 %v460_v10, %v459_v11  ;;  %v439_v16 = vadd.f32 %v619_v27, %v438_v14 }
 0x110   : > { %v462_v17 = vmax.f32 %v444_v13, 0.0 }
 0x111   : > { %762 = vmatpush3.bf16.xpose.msra.mxu1 %v761_v58  ;;  %v461_v18 = vmax.f32 %v439_v16, 0.0 }
 0x112   : > { %763 = vmatprep.subr.bf16.mxu1 %v883_v23 }
 0x113   : > { %v773_v19 = vpack.c.bf16 %v462_v17, %v461_v18 }
 0x119   : > { %765 = vmatpush3.bf16.xpose.msra.mxu1 %v764_v1 }
 0x11a   : > { %766 = vmatprep.subr.bf16.mxu1 %v883_v23 }
 0x121   : > { %768 = vmatpush3.bf16.xpose.msra.mxu1 %v767_v8 }
 0x122   : > { %769 = vmatprep.subr.bf16.mxu1 %v883_v23 }
 0x129   : > { %771 = vmatpush3.bf16.xpose.msra.mxu1 %v770_v15 }
 0x12a   : > { %772 = vmatprep.subr.bf16.mxu1 %v883_v23 }
 0x131   : > { %774 = vmatpush3.bf16.xpose.msra.mxu1 %v773_v19 }
 0x138   : > { %741 = vmatmul.mubr.f32.vlgmr.msra.gmra.mrb[0].mxu1 %v463_v20 }
 0x20b   : > { %v540_v27 = vpop.f32.mrb[0].mxu1 }
 0x20c   : > { %v541_v28 = vadd.f32 %v540_v27, %v473_v26  ;;  %v742_v29 = vpop.f32.mrb[1].mxu1 }
 0x20e   : > { %544 = vst [vmem:[%s219_s7] sm:$0x1] %v541_v28 }
 0x20f   : > { %832 = shalt.err (!%p829_p3)
}
 0x210   : > { %s833_s12 = scalar_lea.hbm %s1038_s11, 16  ;;  %s837_s4 = scalar_lea.hbm %s1085_s5, 32 }
 0x211   : > { %p834_p4 = scmp.ne.s32.totalorder %s1038_s11, %s833_s12  ;;  %p838_p9 = scmp.lt.u32.totalorder %s1038_s11, %s1085_s5 }
 0x212   : > { %p839_p10 = scmp.lt.u32.totalorder %s837_s4, %s833_s12  ;;  %p841_p12 = scmp.lt.u32.totalorder %s833_s12, %s1038_s11 }
 0x213   : > { %p835_p7 = pnand %p834_p4, %p956_p5 }
 0x214   : > { %p840_p11 = por %p839_p10, %p838_p9 }
 0x215   : > { %p836_p8 = pneg %p835_p7 }
 0x216   : > { %p842_p13 = por %p841_p12, %p840_p11 }
 0x218   : > { %p843_p0 = pnand %p842_p13, %p836_p8 }
 0x21a   : > { %846 = shalt.err (!%p843_p0)
}
 0x21b   : > { %775 = dma.vmem_to_hbm [thread:$0]  (%p956_p5), %s1040_s8, 16, %s1038_s11, %s546_s13  }
 0x21c PF: > { %p781_p1 = scmp.ge.s32.totalorder %s881_s23, 2  ;;  %s570_s27 = sand.u32 1, %s869_s20  }
 0x21d   : > { %s571_s6 = scalar_lea.sflag [#allocation4], %s570_s27 }
 0x21e   : > { %p778_p2 = pnand %p781_p1, %p960_p6 }
 0x220   : > { %864 = dma.done.wait (!%p778_p2), %s571_s6, 16  }
 0x221   : > { %866 = vsyncadd (!%p778_p2), %s571_s6, 4294967280  ;;  %p17_p3 = scmp.ge.s32.totalorder %s944_s25, 4   ;;  %s1088_s20 = smov %s873_s21 }
 0x222   : > { %s1089_s21 = smov %s877_s22  ;;  %s1090_s22 = smov %s954_s28 }
 0x223   : > { %s1091_s23 = smov %s944_s25  ;;  %19 = sbr.rel (!%p17_p3) target bundleno = 6 (0x6), region = 75 }
 0x22a   :  { %575 = vsyncpa [#allocation4], 1 }
 0x22b   :  { %577 = vsyncpa [#allocation4 + $0x1], 1 }

// kernel: tpu_custom_call.1
= control target key start
LH: loop header
LB: loop body
LE: loop exit
PB: predicated region body
PF: predicated region fallthrough
CT: control target
= control target key end

     0   :  { %s1080_s0 = inlined_call_operand.vmem [shape: f32[256,32], index: 0, kind: input, shape index: {}]   ;;  %s1081_s1 = inlined_call_operand.vmem [shape: f32[32,128], index: 1, kind: input, shape index: {}]   ;;  %s1082_s2 = inlined_call_operand.vmem [shape: f32[1,128], index: 2, kind: input, shape index: {}]   ;;  %s1083_s3 = inlined_call_operand.vmem [shape: f32[1,128], index: 3, kind: input, shape index: {}]   ;;  %s1084_s4 = inlined_call_operand.<no memory space> [shape: f32[1,1], index: 4, kind: input, shape index: {}]   ;;  %s1085_s5 = inlined_call_operand.hbm [shape: f32[1,256], index: 5, kind: output, shape index: {}]  }
   0x1   :  { %v10_v0 = vstv %s1084_s4 }
   0x2   :  { %11 = vst [vmem:[#allocation2] sm:$0x1] %v10_v0 }
   0x3   :  { %12 = vsyncpa [#allocation4], 0 }
   0x4   :  { %14 = vsyncpa [#allocation4 + $0x1], 0  ;;  %s921_s20 = smov 0   ;;  %s923_s21 = smov 0  }
   0x5   :  { %s925_s22 = smov 0   ;;  %s927_s23 = smov 0  }
   0x6 LB: > { %s612_s4 = sadd.s32 4294967295, %s881_s23   ;;  %s613_s24 = sadd.s32 4294967294, %s881_s23   ;;  %s881_s23 = sphi %s927_s23, %s1091_s23   ;;  %s877_s22 = sphi %s925_s22, %s1090_s22   ;;  %s873_s21 = sphi %s923_s21, %s1089_s21   ;;  %s869_s20 = sphi %s921_s20, %s1088_s20  }
   0x7   : > { %s944_s25 = sadd.s32 1, %s881_s23   ;;  %s137_s26 = sadd.s32 1, %s877_s22 }
   0x8   : > { %s134_s27 = ssub.s32 %s881_s23, %s944_s25  ;;  %p147_p0 = scmp.ne.s32.totalorder %s877_s22, %s873_s21 }
   0x9   : > { %p135_p1 = scmp.eq.s32.totalorder %s134_s27, 0  ;;  %p148_p2 = scmp.eq.s32.totalorder %s612_s4, 1 }
   0xa   : > { %p153_p3 = scmp.ne.s32.totalorder %s873_s21, %s869_s20  ;;  %p154_p4 = scmp.eq.s32.totalorder %s613_s24, 1 }
   0xb   : > { %s954_s28 = scalar_select %p135_p1, %s877_s22, %s137_s26  }
   0xc   : > { %p956_p5 = por %p148_p2, %p147_p0  ;;  %p960_p6 = por %p154_p4, %p153_p3 }
   0xd   : > { %p616_p7 = scmp.ge.s32.totalorder %s881_s23, 1  ;;  %p193_p8 = scmp.lt.s32.totalorder %s881_s23, 3 }
   0xf   : > { %p194_p9 = pnand %p616_p7, %p193_p8 }
  0x10   : > { %v242_v1 = vld [vmem:[%s1081_s1] sm:$0xff] (!%p194_p9)  ;;  %v243_v2 = vld [vmem:[%s1081_s1 + $0x8] sm:$0xff] (!%p194_p9)  ;;  %v244_v3 = vld [vmem:[%s1081_s1 + $0x10] sm:$0xff] (!%p194_p9)  ;;  %s975_s12 = sshll.u32 (!%p194_p9), %s612_s4, 4  ;;  %vm253_vm0 = vcmask (!%p194_p9), 261120   ;;  %v883_v23 = vmov (!%p194_p9), 0.0|0.0  }
  0x11   : > { %197 = sbr.rel (%p194_p9) target bundleno = 540 (0x21c), region = 40  ;;  %v743_v4 = vpack.c.bf16 (!%p194_p9), %v243_v2, %v242_v1  ;;  %v245_v5 = vld [vmem:[%s1081_s1 + $0x18] sm:$0xff] (!%p194_p9)  ;;  %p221_p10 = scmp.lt.s32.totalorder (!%p194_p9), %s975_s12, 31  ;;  %751 = vmatprep.subr.bf16.mxu1 (!%p194_p9), %v883_v23  ;;  %vm884_vm1 = vmmov (!%p194_p9), 0   ;;  %v885_v24 = vmov (!%p194_p9), 0.0   ;;  %v886_v26 = vmov (!%p194_p9), 0  }
  0x12   : > { %v747_v6 = vpack.c.bf16 (!%p194_p9), %v245_v5, %v244_v3  ;;  %740 = vmatprep.mubr.msk.f32.mxu1 (!%p194_p9), %vm884_vm1, %v885_v24  ;;  %v464_v25 = vld [vmem:[#allocation2] sm:$0x1] (!%p194_p9)  ;;  %818 = vset.pattern.permute.xlu0 (!%p194_p9), %v886_v26  ;;  %s218_s6 = sand.u32 (!%p194_p9), 1, %s873_s21   ;;  %s1038_s11 = scalar_lea.hbm (!%p194_p9), %s1085_s5, %s975_s12 }
  0x13   : > { %744 = vmatprep.subr.bf16.mxu0 (!%p194_p9), %v743_v4  ;;  %467 = vperm.xlu0 (!%p194_p9), %818, %v464_v25   ;;  %v619_v27 = vld [vmem:[%s1082_s2] ss:$0 sm:$0xff] (!%p194_p9)  ;;  %s219_s7 = scalar_lea.vmem (!%p194_p9), [#allocation3], %s218_s6  ;;  %s546_s13 = scalar_lea.sflag (!%p194_p9), [#allocation4], %s218_s6 }
  0x14   : > { %746 = vmatpush3.bf16.msra.mxu0 (!%p194_p9), %v743_v4  ;;  %s558_s8 = sshll.u32 (!%p194_p9), %s219_s7, 4  ;;  %s1040_s8 = int_to_ptr.vmem [resolvable:$true] %s558_s8 }
  0x15   : > { %748 = vmatprep.subr.bf16.mxu0 (!%p194_p9), %v747_v6  ;;  %s819_s14 = scalar_lea.vmem (!%p194_p9), %s1040_s8, 16 }
  0x16   : > { %p820_p11 = scmp.ne.s32.totalorder (!%p194_p9), %s1040_s8, %s819_s14 }
  0x18   : > { %s222_s15 = scalar_select %p221_p10, %s975_s12, 31  ;;  %750 = vmatpush3.bf16.msra.mxu0 %v747_v6 }
  0x19   : > { %p821_p12 = pnand %p820_p11, %p956_p5 }
  0x1a   : > { %s618_s16 = sshll.u32 %s222_s15, 3  ;;  %s887_s15 = smov [#allocation3]  }
  0x1b   : > { %s985_s19 = scalar_lea.vmem %s1080_s0, %s618_s16  ;;  %p822_p13 = pneg %p821_p12 }
  0x1c   : > { %v226_v7 = vld [vmem:[%s985_s19] sm:$0xff]  ;;  %v227_v8 = vld [vmem:[%s985_s19 + $0x8] sm:$0xff]  ;;  %v228_v9 = vld [vmem:[%s985_s19 + $0x10] sm:$0xff]  ;;  %s823_s16 = sshll.u32 %s887_s15, 4  ;;  %s824_s16 = int_to_ptr.vmem [resolvable:$false] %s823_s16 }
  0x1d   : > { %684 = vmatprep.mubr.msk.f32.mxu0 %vm253_vm0, %v226_v7  ;;  %v229_v10 = vld [vmem:[%s985_s19 + $0x18] sm:$0xff]  ;;  %v230_v11 = vld [vmem:[%s985_s19 + $0x20] sm:$0xff]  ;;  %v231_v12 = vld [vmem:[%s985_s19 + $0x28] sm:$0xff]  ;;  %s825_s17 = scalar_lea.vmem %s824_s16, 32  ;;  %p826_p0 = scmp.lt.s32.totalorder %s1040_s8, %s824_s16 }
  0x1e   : > { %685 = vmatmul.mubr.msk.f32.vlgmr.msra.gmra.mrb[0].mxu0 %vm253_vm0, %v227_v8  ;;  %v232_v13 = vld [vmem:[%s985_s19 + $0x30] sm:$0xff]  ;;  %v233_v14 = vld [vmem:[%s985_s19 + $0x38] sm:$0xff]  ;;  %v234_v15 = vld [vmem:[%s985_s19 + $0x40] sm:$0xff]  ;;  %p827_p1 = scmp.lt.s32.totalorder %s825_s17, %s819_s14 }
  0x1f   : > { %687 = vmatprep.mubr.msk.f32.mxu0 %vm253_vm0, %v228_v9  ;;  %v235_v16 = vld [vmem:[%s985_s19 + $0x48] sm:$0xff]  ;;  %v236_v17 = vld [vmem:[%s985_s19 + $0x50] sm:$0xff]  ;;  %v237_v18 = vld [vmem:[%s985_s19 + $0x58] sm:$0xff] }
  0x20   : > { %v238_v19 = vld [vmem:[%s985_s19 + $0x60] sm:$0xff]  ;;  %v239_v20 = vld [vmem:[%s985_s19 + $0x68] sm:$0xff]  ;;  %v240_v21 = vld [vmem:[%s985_s19 + $0x70] sm:$0xff]  ;;  %p828_p2 = por %p827_p1, %p826_p0 }
  0x21   : > { %v241_v22 = vld [vmem:[%s985_s19 + $0x78] sm:$0xff] }
  0x22   : > { %688 = vmatmul.mubr.msk.f32.gmra.mrb[2].mxu0 %vm253_vm0, %v229_v10  ;;  %p829_p3 = pnand %p828_p2, %p822_p13 }
  0x23   : > { %690 = vmatprep.mubr.msk.f32.mxu0 %vm253_vm0, %v230_v11 }
  0x26   : > { %691 = vmatmul.mubr.msk.f32.gmra.mrb[4].mxu0 %vm253_vm0, %v231_v12 }
  0x27   : > { %693 = vmatprep.mubr.msk.f32.mxu0 %vm253_vm0, %v232_v13 }
  0x2a   : > { %694 = vmatmul.mubr.msk.f32.gmra.mrb[6].mxu0 %vm253_vm0, %v233_v14 }
  0x2b   : > { %696 = vmatprep.mubr.msk.f32.mxu0 %vm253_vm0, %v234_v15 }
  0x2e   : > { %697 = vmatmul.mubr.msk.f32.gmra.mrb[8].mxu0 %vm253_vm0, %v235_v16 }
  0x2f   : > { %699 = vmatprep.mubr.msk.f32.mxu0 %vm253_vm0, %v236_v17 }
  0x32   : > { %700 = vmatmul.mubr.msk.f32.gmra.mrb[10].mxu0 %vm253_vm0, %v237_v18 }
  0x33   : > { %702 = vmatprep.mubr.msk.f32.mxu0 %vm253_vm0, %v238_v19 }
  0x36   : > { %703 = vmatmul.mubr.msk.f32.gmra.mrb[12].mxu0 %vm253_vm0, %v239_v20  ;;  %v463_v20 = vld [vmem:[%s1083_s3] sm:$0x1] }
  0x37   : > { %705 = vmatprep.mubr.msk.f32.mxu0 %vm253_vm0, %v240_v21  ;;  %v470_v21 = vlaneseq }
  0x3a   : > { %706 = vmatmul.mubr.msk.f32.gmra.mrb[14].mxu0 %vm253_vm0, %v241_v22  ;;  %v471_v22 = vshrl.u32 %v470_v21, 7 }
  0x3c   : > { %v472_v24 = vsub.s32 0, %v471_v22 }
  0x92   : > { %v468_v25 = vpop.permute.xlu0 %467 }
  0x93   : > { %v473_v26 = vrot.slane %v468_v25, %v472_v24 }
  0xf1   : > { %v686_v28 = vpop.f32.mrb[0].mxu0 }
  0xf2   : > { %v374_v29 = vadd.f32 %v686_v28, %v619_v27  ;;  %v368_v30 = vpop.f32.mrb[1].mxu0 }
  0xf3   : > { %v369_v31 = vadd.f32 %v619_v27, %v368_v30 }
  0xf4   : > { %v448_v32 = vmax.f32 %v374_v29, 0.0 }
  0xf5   : > { %v447_v33 = vmax.f32 %v369_v31, 0.0  ;;  %v689_v34 = vpop.f32.mrb[2].mxu0 }
  0xf6   : > { %v384_v35 = vadd.f32 %v689_v34, %v619_v27  ;;  %v378_v36 = vpop.f32.mrb[3].mxu0 }
  0xf7   : > { %v379_v37 = vadd.f32 %v619_v27, %v378_v36  ;;  %v752_v38 = vpack.c.bf16 %v448_v32, %v447_v33 }
  0xf8   : > { %v450_v39 = vmax.f32 %v384_v35, 0.0 }
  0xf9   : > { %v449_v40 = vmax.f32 %v379_v37, 0.0  ;;  %753 = vmatpush3.bf16.xpose.msra.mxu1 %v752_v38  ;;  %v692_v41 = vpop.f32.mrb[4].mxu0 }
  0xfa   : > { %v394_v42 = vadd.f32 %v692_v41, %v619_v27  ;;  %754 = vmatprep.subr.bf16.mxu1 %v883_v23  ;;  %v388_v43 = vpop.f32.mrb[5].mxu0 }
  0xfb   : > { %v755_v44 = vpack.c.bf16 %v450_v39, %v449_v40  ;;  %v389_v45 = vadd.f32 %v619_v27, %v388_v43 }
  0xfc   : > { %v452_v46 = vmax.f32 %v394_v42, 0.0 }
  0xfd   : > { %v451_v47 = vmax.f32 %v389_v45, 0.0  ;;  %v695_v48 = vpop.f32.mrb[6].mxu0 }
  0xfe   : > { %v404_v49 = vadd.f32 %v695_v48, %v619_v27  ;;  %v398_v50 = vpop.f32.mrb[7].mxu0 }
  0xff   : > { %v758_v51 = vpack.c.bf16 %v452_v46, %v451_v47  ;;  %v399_v52 = vadd.f32 %v619_v27, %v398_v50 }
 0x100   : > { %v454_v53 = vmax.f32 %v404_v49, 0.0 }
 0x101   : > { %756 = vmatpush3.bf16.xpose.msra.mxu1 %v755_v44  ;;  %v453_v54 = vmax.f32 %v399_v52, 0.0  ;;  %v698_v55 = vpop.f32.mrb[8].mxu0 }
 0x102   : > { %757 = vmatprep.subr.bf16.mxu1 %v883_v23  ;;  %v414_v56 = vadd.f32 %v698_v55, %v619_v27  ;;  %v408_v57 = vpop.f32.mrb[9].mxu0 }
 0x103   : > { %v761_v58 = vpack.c.bf16 %v454_v53, %v453_v54  ;;  %v409_v59 = vadd.f32 %v619_v27, %v408_v57 }
 0x104   : > { %v456_v60 = vmax.f32 %v414_v56, 0.0 }
 0x105   : > { %v455_v61 = vmax.f32 %v409_v59, 0.0  ;;  %v701_v62 = vpop.f32.mrb[10].mxu0 }
 0x106   : > { %v424_v63 = vadd.f32 %v701_v62, %v619_v27  ;;  %v418_v0 = vpop.f32.mrb[11].mxu0 }
 0x107   : > { %v764_v1 = vpack.c.bf16 %v456_v60, %v455_v61  ;;  %v419_v2 = vadd.f32 %v619_v27, %v418_v0 }
 0x108   : > { %v458_v3 = vmax.f32 %v424_v63, 0.0 }
 0x109   : > { %759 = vmatpush3.bf16.xpose.msra.mxu1 %v758_v51  ;;  %v457_v4 = vmax.f32 %v419_v2, 0.0  ;;  %v704_v5 = vpop.f32.mrb[12].mxu0 }
 0x10a   : > { %760 = vmatprep.subr.bf16.mxu1 %v883_v23  ;;  %v434_v6 = vadd.f32 %v704_v5, %v619_v27  ;;  %v428_v7 = vpop.f32.mrb[13].mxu0 }
 0x10b   : > { %v767_v8 = vpack.c.bf16 %v458_v3, %v457_v4  ;;  %v429_v9 = vadd.f32 %v619_v27, %v428_v7 }
 0x10c   : > { %v460_v10 = vmax.f32 %v434_v6, 0.0 }
 0x10d   : > { %v459_v11 = vmax.f32 %v429_v9, 0.0  ;;  %v707_v12 = vpop.f32.mrb[14].mxu0 }
 0x10e   : > { %v444_v13 = vadd.f32 %v707_v12, %v619_v27  ;;  %v438_v14 = vpop.f32.mrb[15].mxu0 }
 0x10f   : > { %v770_v15 = vpack.c.bf16 %v460_v10, %v459_v11  ;;  %v439_v16 = vadd.f32 %v619_v27, %v438_v14 }
 0x110   : > { %v462_v17 = vmax.f32 %v444_v13, 0.0 }
 0x111   : > { %762 = vmatpush3.bf16.xpose.msra.mxu1 %v761_v58  ;;  %v461_v18 = vmax.f32 %v439_v16, 0.0 }
 0x112   : > { %763 = vmatprep.subr.bf16.mxu1 %v883_v23 }
 0x113   : > { %v773_v19 = vpack.c.bf16 %v462_v17, %v461_v18 }
 0x119   : > { %765 = vmatpush3.bf16.xpose.msra.mxu1 %v764_v1 }
 0x11a   : > { %766 = vmatprep.subr.bf16.mxu1 %v883_v23 }
 0x121   : > { %768 = vmatpush3.bf16.xpose.msra.mxu1 %v767_v8 }
 0x122   : > { %769 = vmatprep.subr.bf16.mxu1 %v883_v23 }
 0x129   : > { %771 = vmatpush3.bf16.xpose.msra.mxu1 %v770_v15 }
 0x12a   : > { %772 = vmatprep.subr.bf16.mxu1 %v883_v23 }
 0x131   : > { %774 = vmatpush3.bf16.xpose.msra.mxu1 %v773_v19 }
 0x138   : > { %741 = vmatmul.mubr.f32.vlgmr.msra.gmra.mrb[0].mxu1 %v463_v20 }
 0x20b   : > { %v540_v27 = vpop.f32.mrb[0].mxu1 }
 0x20c   : > { %v541_v28 = vadd.f32 %v540_v27, %v473_v26  ;;  %v742_v29 = vpop.f32.mrb[1].mxu1 }
 0x20e   : > { %544 = vst [vmem:[%s219_s7] sm:$0x1] %v541_v28 }
 0x20f   : > { %832 = shalt.err (!%p829_p3)
}
 0x210   : > { %s833_s12 = scalar_lea.hbm %s1038_s11, 16  ;;  %s837_s4 = scalar_lea.hbm %s1085_s5, 32 }
 0x211   : > { %p834_p4 = scmp.ne.s32.totalorder %s1038_s11, %s833_s12  ;;  %p838_p9 = scmp.lt.u32.totalorder %s1038_s11, %s1085_s5 }
 0x212   : > { %p839_p10 = scmp.lt.u32.totalorder %s837_s4, %s833_s12  ;;  %p841_p12 = scmp.lt.u32.totalorder %s833_s12, %s1038_s11 }
 0x213   : > { %p835_p7 = pnand %p834_p4, %p956_p5 }
 0x214   : > { %p840_p11 = por %p839_p10, %p838_p9 }
 0x215   : > { %p836_p8 = pneg %p835_p7 }
 0x216   : > { %p842_p13 = por %p841_p12, %p840_p11 }
 0x218   : > { %p843_p0 = pnand %p842_p13, %p836_p8 }
 0x21a   : > { %846 = shalt.err (!%p843_p0)
}
 0x21b   : > { %775 = dma.vmem_to_hbm [thread:$0]  (%p956_p5), %s1040_s8, 16, %s1038_s11, %s546_s13  }
 0x21c PF: > { %p781_p1 = scmp.ge.s32.totalorder %s881_s23, 2  ;;  %s570_s27 = sand.u32 1, %s869_s20  }
 0x21d   : > { %s571_s6 = scalar_lea.sflag [#allocation4], %s570_s27 }
 0x21e   : > { %p778_p2 = pnand %p781_p1, %p960_p6 }
 0x220   : > { %864 = dma.done.wait (!%p778_p2), %s571_s6, 16  }
 0x221   : > { %866 = vsyncadd (!%p778_p2), %s571_s6, 4294967280  ;;  %p17_p3 = scmp.ge.s32.totalorder %s944_s25, 4   ;;  %s1088_s20 = smov %s873_s21 }
 0x222   : > { %s1089_s21 = smov %s877_s22  ;;  %s1090_s22 = smov %s954_s28 }
 0x223   : > { %s1091_s23 = smov %s944_s25  ;;  %19 = sbr.rel (!%p17_p3) target bundleno = 6 (0x6), region = 75 }
 0x22a   :  { %575 = vsyncpa [#allocation4], 1 }
 0x22b   :  { %577 = vsyncpa [#allocation4 + $0x1], 1 }

</bundles_post_ra>
